<compile_context>
chip_gen: v6e
topology: v6e:2x2x1
jax: 0.10.0
libtpu: 0.0.40
codegen_flags: <defaults>
</compile_context>

<pallas_src>
import jax
import jax.numpy as jnp
from jax import lax
from jax.experimental import pallas as pl
from jax.experimental.pallas import tpu as pltpu

_EPS = 1e-6              # torch F.pairwise_distance default eps (added to the diff)
_MAX_BLOCK_ROWS = 8192   # keeps per-op unrolling and [tb,1] intermediates modest


def _round_up(x, m):
    return (x + m - 1) // m * m


def _device_kind():
    try:
        return jax.devices()[0].device_kind.lower()
    except Exception:
        return ""


def _vmem_plan(kind):
    """(block_budget_bytes, vmem_limit_bytes or None) per TPU generation."""
    if "v7" in kind:     # 64 MiB physical VMEM per TensorCore
        return 16 << 20, 48 << 20
    if "v6" in kind:     # 128 MiB physical, 32 MiB default scoped limit
        return 24 << 20, 96 << 20
    if "v5" in kind:     # 128 MiB physical, 16 MiB default scoped limit
        return 16 << 20, 64 << 20
    # Unknown / older generation: stay well inside a 16 MiB default scoped limit.
    return 3 << 20, None


def _num_tensorcores(kind):
    return 2 if "v7" in kind else 1   # v5e / v6e are single-TensorCore


def _pick_block_rows(batch, feat, itemsize, budget_bytes):
    # Native sublane tile per dtype: 8 rows (f32), 16 (bf16), 32 (int8/fp8).
    row_mult = 8 * max(1, 4 // itemsize)
    # 3 inputs x 2 pipeline buffers of (tb, feat) must fit the block budget.
    tb = budget_bytes // (6 * feat * itemsize)
    tb = (tb // row_mult) * row_mult
    tb = max(row_mult, min(tb, _MAX_BLOCK_ROWS))
    return min(tb, _round_up(batch, row_mult))


def _make_kernel(tb, batch, tiles_per_core, two_core):
    def kernel(a_ref, p_ref, n_ref, out_ref):
        if two_core:
            t = pl.program_id(1)
            tile = pl.program_id(0) * tiles_per_core + t
        else:
            t = pl.program_id(0)
            tile = t

        @pl.when(t == 0)
        def _init():
            out_ref[...] = jnp.zeros_like(out_ref)

        a = a_ref[...].astype(jnp.float32)
        p = p_ref[...].astype(jnp.float32)
        n = n_ref[...].astype(jnp.float32)

        # F.pairwise_distance(x, y, p=2, eps=1e-6) == ||x - y + eps||_2 over last dim
        dpos = jnp.sqrt(jnp.sum(jnp.square(a - p + _EPS), axis=-1, keepdims=True))
        dneg = jnp.sqrt(jnp.sum(jnp.square(a - n + _EPS), axis=-1, keepdims=True))
        x = dpos - dneg                                        # [tb, 1]

        # numerically stable softplus == log1p(exp(x))
        sp = jnp.maximum(x, 0.0) + jnp.log1p(jnp.exp(-jnp.abs(x)))

        # Mask rows past the real batch (ragged last block / clamped extra tiles).
        # jnp.where is a SELECT, so garbage/NaN in OOB rows cannot leak into the sum.
        rows = tile * tb + lax.broadcasted_iota(jnp.int32, sp.shape, 0)
        sp = jnp.where(rows < batch, sp, 0.0)

        # Accumulate into this core's resident (1,1,1) output block.
        out_ref[...] += jnp.sum(sp)

    return kernel


def soft_margin_triplet_loss(emb_anchor, emb_pos, emb_neg):
    """mean(log1p(exp(||a-p+eps||_2 - ||a-n+eps||_2))) over the batch, as float32.

    emb_*: [B, D]. bf16 inputs are the fast path (half the HBM traffic); the f32
    cast happens in-kernel. No host-side padding is performed.
    """
    assert emb_anchor.shape == emb_pos.shape == emb_neg.shape
    assert emb_anchor.ndim == 2
    B, D = emb_anchor.shape

    kind = _device_kind()
    budget, vmem_limit = _vmem_plan(kind)
    itemsize = jnp.dtype(emb_anchor.dtype).itemsize
    tb = _pick_block_rows(B, D, itemsize, budget)
    tiles = pl.cdiv(B, tb)

    two_core = (_num_tensorcores(kind) == 2) and (tiles > 1)

    if two_core:
        num_cores = 2
        tiles_per_core = pl.cdiv(tiles, num_cores)
        grid = (num_cores, tiles_per_core)

        def in_map(c, t):
            # Clamp fully-out-of-range tiles (odd tile counts) onto a valid block;
            # their rows are discarded in-kernel by the logical `rows < B` mask.
            return (jnp.minimum(c * tiles_per_core + t, tiles - 1), 0)

        in_spec = pl.BlockSpec((tb, D), in_map)
        out_spec = pl.BlockSpec((1, 1, 1), lambda c, t: (c, 0, 0))
        out_shape = jax.ShapeDtypeStruct((num_cores, 1, 1), jnp.float32)
        dim_sem = (getattr(pltpu, "CORE_PARALLEL", pltpu.PARALLEL), pltpu.ARBITRARY)
        kernel = _make_kernel(tb, B, tiles_per_core, True)
    else:
        grid = (tiles,)
        in_spec = pl.BlockSpec((tb, D), lambda t: (t, 0))
        out_spec = pl.BlockSpec((1, 1, 1), lambda t: (0, 0, 0))
        out_shape = jax.ShapeDtypeStruct((1, 1, 1), jnp.float32)
        dim_sem = ("arbitrary",)
        kernel = _make_kernel(tb, B, 1, False)

    cp_kwargs = dict(dimension_semantics=dim_sem)
    if vmem_limit is not None:
        cp_kwargs["vmem_limit_bytes"] = int(vmem_limit)

    partials = pl.pallas_call(
        kernel,
        out_shape=out_shape,
        grid=grid,
        in_specs=[in_spec, in_spec, in_spec],
        out_specs=out_spec,
        compiler_params=pltpu.CompilerParams(**cp_kwargs),
    )(emb_anchor, emb_pos, emb_neg)

    # combine per-core partial sums; mean over the real batch
    return jnp.sum(partials) / B


def _reference(a, p, n):
    a = a.astype(jnp.float32)
    p = p.astype(jnp.float32)
    n = n.astype(jnp.float32)
    dpos = jnp.sqrt(jnp.sum(jnp.square(a - p + _EPS), axis=-1))
    dneg = jnp.sqrt(jnp.sum(jnp.square(a - n + _EPS), axis=-1))
    x = dpos - dneg
    # stable softplus == log1p(exp(x)); identical to torch wherever exp doesn't overflow
    return jnp.mean(jnp.maximum(x, 0.0) + jnp.log1p(jnp.exp(-jnp.abs(x))))


if __name__ == "__main__":
    root = jax.random.PRNGKey(0)

    def _check(B, D, dtype, tol):
        k1, k2, k3 = jax.random.split(jax.random.fold_in(root, B * 7919 + D), 3)
        a = jax.random.normal(k1, (B, D), dtype=jnp.float32).astype(dtype)
        p = jax.random.normal(k2, (B, D), dtype=jnp.float32).astype(dtype)
        n = jax.random.normal(k3, (B, D), dtype=jnp.float32).astype(dtype)
        out = jax.block_until_ready(soft_margin_triplet_loss(a, p, n))
        ref = jax.block_until_ready(_reference(a, p, n))
        assert jnp.allclose(out, ref, rtol=tol, atol=tol), (B, D, str(dtype), out, ref)

    _check(8, 32, jnp.float32, 1e-5)      # small aligned batch (module demo shape)
    _check(50, 128, jnp.float32, 1e-5)    # ragged batch: no host-side padding, masked tail
    _check(64, 256, jnp.bfloat16, 1e-4)   # bf16 fast path (halves HBM traffic)
    print("KERNEL_OK")
</pallas_src>

<mosaic_0001>
module attributes {stable_mosaic.version = 11 : i64} {
  func.func @kernel(%arg0: i32, %arg1: memref<8x32xf32, #tpu.memory_space<vmem>>, %arg2: memref<8x32xf32, #tpu.memory_space<vmem>>, %arg3: memref<8x32xf32, #tpu.memory_space<vmem>>, %arg4: memref<1x1x1xf32, #tpu.memory_space<vmem>>) attributes {dimension_semantics = [#tpu.dimension_semantics<arbitrary>], iteration_bounds = array<i64: 1>, scalar_prefetch = 0 : i64, scratch_operands = 0 : i64, tpu.core_type = #tpu.core_type<tc>, window_params = [{transform_indices = @transform_0, window_bounds = array<i64: 8, 32>}, {transform_indices = @transform_1, window_bounds = array<i64: 8, 32>}, {transform_indices = @transform_2, window_bounds = array<i64: 8, 32>}, {pipeline_mode = #tpu.pipeline_mode<synchronous>, transform_indices = @transform_3, window_bounds = array<i64: 1, 1, 1>}]} {
    %c0_i32 = arith.constant 0 : i32
    %0 = arith.cmpi eq, %arg0, %c0_i32 : i32
    %1 = arith.extui %0 : i1 to i32
    %c0_i32_0 = arith.constant 0 : i32
    %2 = arith.cmpi ne, %1, %c0_i32_0 : i32
    scf.if %2 {
      %cst_20 = arith.constant 0.000000e+00 : f32
      %45 = vector.broadcast %cst_20 : f32 to vector<1x1x1xf32>
      %c0_21 = arith.constant 0 : index
      %c0_22 = arith.constant 0 : index
      %c0_23 = arith.constant 0 : index
      %46 = vector.load %arg4[%c0_21, %c0_22, %c0_23] : memref<1x1x1xf32, #tpu.memory_space<vmem>>, vector<1x1x1xf32>
      tpu.vector_store %arg4[%c0_21, %c0_22, %c0_23], %45 {strides = array<i32>} : memref<1x1x1xf32, #tpu.memory_space<vmem>>, vector<1x1x1xf32>,
    } else {
    }
    %c0 = arith.constant 0 : index
    %c0_1 = arith.constant 0 : index
    %3 = vector.load %arg1[%c0, %c0_1] : memref<8x32xf32, #tpu.memory_space<vmem>>, vector<8x32xf32>
    %c0_2 = arith.constant 0 : index
    %c0_3 = arith.constant 0 : index
    %4 = vector.load %arg2[%c0_2, %c0_3] : memref<8x32xf32, #tpu.memory_space<vmem>>, vector<8x32xf32>
    %c0_4 = arith.constant 0 : index
    %c0_5 = arith.constant 0 : index
    %5 = vector.load %arg3[%c0_4, %c0_5] : memref<8x32xf32, #tpu.memory_space<vmem>>, vector<8x32xf32>
    %6 = arith.subf %3, %4 : vector<8x32xf32>
    %cst = arith.constant 9.99999997E-7 : f32
    %7 = vector.broadcast %cst : f32 to vector<8x32xf32>
    %8 = arith.addf %6, %7 : vector<8x32xf32>
    %9 = arith.mulf %8, %8 : vector<8x32xf32>
    %cst_6 = arith.constant dense<0.000000e+00> : vector<8xf32>
    %10 = vector.multi_reduction <add>, %9, %cst_6 [1] : vector<8x32xf32> to vector<8xf32>
    %11 = vector.shape_cast %10 : vector<8xf32> to vector<8x1xf32>
    %12 = math.sqrt %11 : vector<8x1xf32>
    %13 = arith.subf %3, %5 : vector<8x32xf32>
    %cst_7 = arith.constant 9.99999997E-7 : f32
    %14 = vector.broadcast %cst_7 : f32 to vector<8x32xf32>
    %15 = arith.addf %13, %14 : vector<8x32xf32>
    %16 = arith.mulf %15, %15 : vector<8x32xf32>
    %cst_8 = arith.constant dense<0.000000e+00> : vector<8xf32>
    %17 = vector.multi_reduction <add>, %16, %cst_8 [1] : vector<8x32xf32> to vector<8xf32>
    %18 = vector.shape_cast %17 : vector<8xf32> to vector<8x1xf32>
    %19 = math.sqrt %18 : vector<8x1xf32>
    %20 = arith.subf %12, %19 : vector<8x1xf32>
    %cst_9 = arith.constant 0.000000e+00 : f32
    %21 = vector.broadcast %cst_9 : f32 to vector<8x1xf32>
    %22 = arith.maximumf %20, %21 : vector<8x1xf32>
    %23 = math.absf %20 : vector<8x1xf32>
    %cst_10 = arith.constant 0.000000e+00 : f32
    %24 = vector.broadcast %cst_10 : f32 to vector<8x1xf32>
    %25 = arith.subf %24, %23 : vector<8x1xf32>
    %26 = math.exp %25 : vector<8x1xf32>
    %27 = math.log1p %26 : vector<8x1xf32>
    %28 = arith.addf %22, %27 : vector<8x1xf32>
    %c8_i32 = arith.constant 8 : i32
    %29 = arith.muli %arg0, %c8_i32 : i32
    %30 = tpu.iota {dimensions = array<i32: 0>} : vector<8x1xi32>
    %31 = vector.broadcast %29 : i32 to vector<8x1xi32>
    %32 = arith.addi %31, %30 : vector<8x1xi32>
    %c8_i32_11 = arith.constant 8 : i32
    %33 = vector.broadcast %c8_i32_11 : i32 to vector<8x1xi32>
    %34 = arith.cmpi slt, %32, %33 : vector<8x1xi32>
    %cst_12 = arith.constant 0.000000e+00 : f32
    %35 = vector.broadcast %cst_12 : f32 to vector<8x1xf32>
    %36 = arith.select %34, %28, %35 : vector<8x1xi1>, vector<8x1xf32>
    %c0_13 = arith.constant 0 : index
    %c0_14 = arith.constant 0 : index
    %c0_15 = arith.constant 0 : index
    %37 = vector.load %arg4[%c0_13, %c0_14, %c0_15] : memref<1x1x1xf32, #tpu.memory_space<vmem>>, vector<1x1x1xf32>
    %38 = vector.shape_cast %36 : vector<8x1xf32> to vector<1x8x1xf32>
    %cst_16 = arith.constant dense<0.000000e+00> : vector<1xf32>
    %39 = vector.multi_reduction <add>, %38, %cst_16 [1, 2] : vector<1x8x1xf32> to vector<1xf32>
    %40 = vector.shape_cast %39 : vector<1xf32> to vector<1x1x1xf32>
    %41 = vector.extract %40[0, 0, 0] : f32 from vector<1x1x1xf32>
    %42 = vector.broadcast %41 : f32 to vector<1x1x1xf32>
    %43 = arith.addf %37, %42 : vector<1x1x1xf32>
    %c0_17 = arith.constant 0 : index
    %c0_18 = arith.constant 0 : index
    %c0_19 = arith.constant 0 : index
    %44 = vector.load %arg4[%c0_17, %c0_18, %c0_19] : memref<1x1x1xf32, #tpu.memory_space<vmem>>, vector<1x1x1xf32>
    tpu.vector_store %arg4[%c0_17, %c0_18, %c0_19], %43 {strides = array<i32>} : memref<1x1x1xf32, #tpu.memory_space<vmem>>, vector<1x1x1xf32>,
    return
  }
  func.func @transform_0(%arg0: i32) -> (i32, i32) {
    %c0_i32 = arith.constant 0 : i32
    %c0_i32_0 = arith.constant 0 : i32
    return %arg0, %c0_i32 : i32, i32
  }
  func.func @transform_1(%arg0: i32) -> (i32, i32) {
    %c0_i32 = arith.constant 0 : i32
    %c0_i32_0 = arith.constant 0 : i32
    return %arg0, %c0_i32 : i32, i32
  }
  func.func @transform_2(%arg0: i32) -> (i32, i32) {
    %c0_i32 = arith.constant 0 : i32
    %c0_i32_0 = arith.constant 0 : i32
    return %arg0, %c0_i32 : i32, i32
  }
  func.func @transform_3(%arg0: i32) -> (i32, i32, i32) {
    %c0_i32 = arith.constant 0 : i32
    %c0_i32_0 = arith.constant 0 : i32
    %c0_i32_1 = arith.constant 0 : i32
    %c0_i32_2 = arith.constant 0 : i32
    return %c0_i32, %c0_i32_0, %c0_i32_1 : i32, i32, i32
  }
}

</mosaic_0001>

<bundles_post_ra>
// kernel: tpu_custom_call.1
= control target key start
LH: loop header
LB: loop body
LE: loop exit
PB: predicated region body
PF: predicated region fallthrough
CT: control target
= control target key end

     0   :  { %8 = vsyncpa [#allocation3], 0  ;;  %s281_s0 = inlined_call_operand.hbm [shape: f32[8,32], index: 0, kind: input, shape index: {}]   ;;  %s282_s1 = inlined_call_operand.hbm [shape: f32[8,32], index: 1, kind: input, shape index: {}]   ;;  %s283_s2 = inlined_call_operand.hbm [shape: f32[8,32], index: 2, kind: input, shape index: {}]   ;;  %s284_s3 = inlined_call_operand.hbm [shape: f32[1,1,1], index: 3, kind: output, shape index: {}]  }
   0x1   :  { %9 = vsyncpa [#allocation6], 0 }
   0x2   :  { %10 = vsyncpa [#allocation4], 0  ;;  %s242_s12 = smov [#allocation5]   ;;  %s243_s14 = smov [#allocation2]  }
   0x3   :  { %s27_s13 = sshll.u32 %s242_s12, 4  ;;  %s17_s15 = sshll.u32 %s243_s14, 4  ;;  %s28_s13 = int_to_ptr.vmem [resolvable:$true] %s27_s13  ;;  %s18_s15 = int_to_ptr.vmem [resolvable:$true] %s17_s15 }
   0x4   :  { %s164_s16 = scalar_lea.vmem %s28_s13, 128  ;;  %p169_p1 = scmp.lt.s32.totalorder %s28_s13, %s28_s13 }
   0x5   :  { %p165_p0 = scmp.ne.s32.totalorder %s28_s13, %s164_s16  ;;  %p170_p2 = scmp.lt.s32.totalorder %s164_s16, %s164_s16 }
   0x7   :  { %p171_p3 = por %p170_p2, %p169_p1 }
   0x9   :  { %p172_p4 = pnand %p171_p3, %p165_p0 }
   0xb   :  { %175 = shalt.err (!%p172_p4)
}
   0xc   :  { %30 = dma.hbm_to_vmem [thread:$0]  %s282_s1, 128, %s28_s13, [#allocation6]  }
   0xd   :  { %s184_s19 = scalar_lea.vmem %s18_s15, 128  ;;  %p189_p6 = scmp.lt.s32.totalorder %s18_s15, %s18_s15 }
   0xe   :  { %p185_p5 = scmp.ne.s32.totalorder %s18_s15, %s184_s19  ;;  %p190_p7 = scmp.lt.s32.totalorder %s184_s19, %s184_s19 }
  0x10   :  { %p191_p8 = por %p190_p7, %p189_p6 }
  0x12   :  { %p192_p9 = pnand %p191_p8, %p185_p5 }
  0x14   :  { %195 = shalt.err (!%p192_p9)
}
  0x15   :  { %20 = dma.hbm_to_vmem [thread:$0]  %s281_s0, 128, %s18_s15, [#allocation3]  }
  0x16   :  { %s244_s22 = smov [#allocation7]  }
  0x17   :  { %s37_s23 = sshll.u32 %s244_s22, 4  ;;  %s38_s23 = int_to_ptr.vmem [resolvable:$true] %s37_s23 }
  0x18   :  { %s204_s24 = scalar_lea.vmem %s38_s23, 128  ;;  %p209_p11 = scmp.lt.s32.totalorder %s38_s23, %s38_s23 }
  0x19   :  { %p205_p10 = scmp.ne.s32.totalorder %s38_s23, %s204_s24  ;;  %p210_p12 = scmp.lt.s32.totalorder %s204_s24, %s204_s24 }
  0x1b   :  { %p211_p13 = por %p210_p12, %p209_p11 }
  0x1d   :  { %p212_p0 = pnand %p211_p13, %p205_p10 }
  0x1f   :  { %215 = shalt.err (!%p212_p0)
}
  0x20   :  { %40 = dma.hbm_to_vmem [thread:$0]  %s283_s2, 128, %s38_s23, [#allocation6]  }
  0x21   :  { %236 = dma.done.wait [#allocation3], 128  }
  0x22   :  { %237 = vsyncadd [#allocation3], 4294967168 }
  0x23   :  { %238 = dma.done.wait [#allocation6], 256  }
  0x24   :  { %239 = vsyncadd [#allocation6], 4294967040  ;;  %vm54_vm0 = vcmask 0   ;;  %v245_v0 = vmov 0.0   ;;  %v56_v1 = vld [vmem:[#allocation2] sm:$0xff]  ;;  %v57_v2 = vld [vmem:[#allocation5] sm:$0xff] }
  0x25   :  { %55 = vst.msk [vmem:[#allocation8] sm:$0x1] %vm54_vm0, %v245_v0  ;;  %v58_v3 = vld [vmem:[#allocation7] sm:$0xff]  ;;  %v59_v4 = vsub.f32 %v56_v1, %v57_v2  ;;  %vm62_vm1 = vcmask 261120   ;;  %vm110_vm7 = vcmask 7168   ;;  %s246_s0 = smov [#allocation8]  }
  0x26   :  { %v73_v5 = vsub.f32 %v56_v1, %v58_v3  ;;  %s131_s2 = sshll.u32 %s246_s0, 4  ;;  %s132_s2 = int_to_ptr.vmem [resolvable:$true] %s131_s2 }
  0x27   :  { %v60_v6 = vadd.f32 1e-06, %v59_v4  ;;  %s216_s27 = scalar_lea.vmem %s132_s2, 16  ;;  %s220_s28 = scalar_lea.vmem %s132_s2, 32 }
  0x28   :  { %v74_v7 = vadd.f32 1e-06, %v73_v5  ;;  %p217_p1 = scmp.ne.s32.totalorder %s132_s2, %s216_s27  ;;  %p221_p2 = scmp.lt.s32.totalorder %s132_s2, %s132_s2 }
  0x29   :  { %v61_v8 = vmul.f32 %v60_v6, %v60_v6  ;;  %p222_p3 = scmp.lt.s32.totalorder %s220_s28, %s216_s27 }
  0x2a   :  { %v75_v9 = vmul.f32 %v74_v7, %v74_v7 }
  0x2b   :  { %v63_v10 = vsel %vm62_vm1, %v61_v8, 0.0  ;;  %p223_p4 = por %p222_p3, %p221_p2 }
  0x2c   :  { %64 = vadd.xlane.f32.xlu0 %v63_v10  ;;  %v76_v11 = vsel %vm62_vm1, %v75_v9, 0.0  ;;  %v109_v47 = vld [vmem:[#allocation8] sm:$0x1] }
  0x2d   :  { %p224_p5 = pnand %p223_p4, %p217_p1 }
  0x30   :  { %77 = vadd.xlane.f32.xlu0 %v76_v11 }
  0xb5   :  { %v65_v12 = vpop.xlane.xlu0 %64 }
  0xb6   :  { %148 = vrsqrt.f32 %v65_v12  ;;  %vm68_vm2 = vcmp.eq.f32.partialorder %v65_v12, inf  ;;  %v71_v20 = vand.u32 2147483648, %v65_v12  ;;  %vm70_vm5 = vcmp.eq.f32.partialorder %v65_v12, 0.0 }
  0xb9   :  { %v78_v13 = vpop.xlane.xlu0 %77 }
  0xba   :  { %150 = vrsqrt.f32 %v78_v13  ;;  %vm81_vm3 = vcmp.eq.f32.partialorder %v78_v13, inf  ;;  %v84_v19 = vand.u32 2147483648, %v78_v13  ;;  %vm83_vm4 = vcmp.eq.f32.partialorder %v78_v13, 0.0 }
  0xc3   :  { %v149_v14 = vpop.eup %148 }
  0xc4   :  { %v67_v15 = vmul.f32 %v149_v14, %v65_v12 }
  0xc6   :  { %v69_v18 = vsel %vm68_vm2, %v65_v12, %v67_v15 }
  0xc7   :  { %v151_v16 = vpop.eup %150  ;;  %v72_v22 = vsel %vm70_vm5, %v71_v20, %v69_v18 }
  0xc8   :  { %v80_v17 = vmul.f32 %v151_v16, %v78_v13 }
  0xca   :  { %v82_v21 = vsel %vm81_vm3, %v78_v13, %v80_v17 }
  0xcb   :  { %v85_v23 = vsel %vm83_vm4, %v84_v19, %v82_v21 }
  0xcc   :  { %v86_v24 = vsub.f32 %v72_v22, %v85_v23 }
  0xce   :  { %v88_v25 = vand.u32 2147483647, %v86_v24  ;;  %v87_v36 = vmax.f32 %v86_v24, 0.0 }
  0xd0   :  { %v89_v26 = vsub.f32 0.0, %v88_v25 }
  0xd2   :  { %v90_v27 = vmul.f32 1.442695, %v89_v26 }
  0xd4   :  { %152 = vpow2.f32 %v90_v27 }
  0xe1   :  { %v153_v28 = vpop.eup %152 }
  0xe2   :  { %v92_v29 = vadd.f32 1.0, %v153_v28  ;;  %v95_v30 = vmul.f32 -0.5, %v153_v28  ;;  %v98_v32 = vand.u32 2147483647, %v153_v28 }
  0xe4   :  { %154 = vlog2.f32 %v92_v29  ;;  %v96_v31 = vadd.f32 1.0, %v95_v30  ;;  %vm99_vm6 = vcmp.lt.f32.partialorder %v98_v32, 0.0004427343 }
  0xe6   :  { %v97_v35 = vmul.f32 %v153_v28, %v96_v31 }
  0xf1   :  { %v155_v33 = vpop.eup %154 }
  0xf2   :  { %v94_v34 = vmul.f32 0.6931472, %v155_v33 }
  0xf4   :  { %v100_v37 = vsel %vm99_vm6, %v97_v35, %v94_v34 }
  0xf5   :  { %v101_v38 = vadd.f32 %v100_v37, %v87_v36 }
  0xf7   :  { %v111_v39 = vsel %vm110_vm7, %v101_v38, 0.0 }
  0xf8   :  { %112 = vadd.xlane.f32.xlu1 %v111_v39 }
 0x181   :  { %v113_v40 = vpop.xlane.xlu1 %112 }
 0x182   :  { %v114_v41 = vrot.slane %v113_v40, 4 }
 0x184   :  { %v115_v42 = vadd.f32 %v114_v41, %v113_v40 }
 0x186   :  { %v116_v43 = vrot.slane %v115_v42, 2 }
 0x188   :  { %v117_v44 = vadd.f32 %v116_v43, %v115_v42 }
 0x18a   :  { %v118_v45 = vrot.slane %v117_v44, 1 }
 0x18c   :  { %v119_v46 = vadd.f32 %v118_v45, %v117_v44 }
 0x18e   :  { %141 = vpush %v119_v46 }
 0x1bf   :  { %s142_s26 = spop %141 }
 0x1c0   :  { %v121_v48 = vstv %s142_s26 }
 0x1c1   :  { %v122_v49 = vadd.f32 %v121_v48, %v109_v47 }
 0x1c3   :  { %124 = vst.msk [vmem:[#allocation8] sm:$0x1] %vm54_vm0, %v122_v49 }
 0x1c4   :  { %227 = shalt.err (!%p224_p5)
}
 0x1c5   :  { %134 = dma.vmem_to_hbm [thread:$0]  %s132_s2, 16, %s284_s3, [#allocation4]  }
 0x1c6   :  { %240 = dma.done.wait [#allocation4], 16  }
 0x1c7   :  { %241 = vsyncadd [#allocation4], 4294967280 }
 0x1c8   :  { %138 = vsyncpa [#allocation3], 1 }
 0x1c9   :  { %139 = vsyncpa [#allocation6], 1 }
 0x1ca   :  { %140 = vsyncpa [#allocation4], 1 }

</bundles_post_ra>
